<compile_context>
chip_gen: v6e
topology: v6e:2x2x1
jax: 0.10.0
libtpu: 0.0.40
codegen_flags: <defaults>
</compile_context>

<pallas_src>
import math

import jax
import jax.numpy as jnp
from jax.experimental import pallas as pl
from jax.experimental.pallas import tpu as pltpu

_BN_EPS = 1e-5


def _focus_conv_kernel(p_ref, w_ref, b_ref, o_ref):
    """Fused (Focus-)1x1-conv + folded BatchNorm + ReLU for one batch element.

    p_ref: (1, N, K)   patches, N = H/2*W/2, K = 4*C1
    w_ref: (K, C2)     BN-folded, channel-permuted conv weight
    b_ref: (1, C2)     BN-folded bias
    o_ref: (1, N, C2)
    """
    p = p_ref[0]                                                   # (N, K)
    y = jnp.dot(p, w_ref[...], preferred_element_type=jnp.float32)  # MXU
    y = y + b_ref[...]                                             # (1, C2) broadcasts
    o_ref[0] = jnp.maximum(y, 0.0).astype(o_ref.dtype)             # ReLU


@jax.jit
def q_focus(x, params):
    """x: (B, C1, H, W) float32 (NCHW, matching the PyTorch module). Returns NCHW."""
    B, C1, H, W = x.shape
    H2, W2 = H // 2, W // 2
    N = H2 * W2
    K = 4 * C1
    C2 = params['conv_weight'].shape[0]

    # ---- Focus space-to-depth as a single layout transform (feature order (rp, cp, c)) ----
    p = x.reshape(B, C1, H2, 2, W2, 2)            # (B, C1, H2, rp, W2, cp)
    p = p.transpose(0, 2, 4, 3, 5, 1)             # (B, H2, W2, rp, cp, C1)
    p = p.reshape(B, N, K)                        # lane-dense patch matrix

    # ---- fold PyTorch concat order + BatchNorm into the 1x1 conv weight/bias ----
    w = params['conv_weight'].reshape(C2, K)      # PyTorch order: idx = (cp*2 + rp)*C1 + c
    w = w.reshape(C2, 2, 2, C1).transpose(0, 2, 1, 3).reshape(C2, K)   # -> (rp*2 + cp)*C1 + c
    scale = params['bn_gamma'] / jnp.sqrt(params['bn_var'] + _BN_EPS)
    w_fused = (w * scale[:, None]).T              # (K, C2), BN scale folded in
    b_fused = (params['bn_beta'] - params['bn_mean'] * scale).reshape(1, C2)

    out = pl.pallas_call(
        _focus_conv_kernel,
        out_shape=jax.ShapeDtypeStruct((B, N, C2), x.dtype),
        grid=(B,),
        in_specs=[
            pl.BlockSpec((1, N, K), lambda b: (b, 0, 0)),   # patches, per-batch block
            pl.BlockSpec((K, C2), lambda b: (0, 0)),        # fused weight (constant)
            pl.BlockSpec((1, C2), lambda b: (0, 0)),        # fused bias (constant)
        ],
        out_specs=pl.BlockSpec((1, N, C2), lambda b: (b, 0, 0)),
        compiler_params=pltpu.CompilerParams(
            dimension_semantics=("parallel",)),
    )(p, w_fused, b_fused)                                  # (B, N, C2)

    # back to the module's NCHW convention
    return out.reshape(B, H2, W2, C2).transpose(0, 3, 1, 2)


def reference(x, params):
    """Pure-JAX mirror of the PyTorch forward (Focus concat -> conv -> BN -> ReLU)."""
    C2 = params['conv_weight'].shape[0]
    xc = jnp.concatenate(
        [x[..., ::2, ::2], x[..., 1::2, ::2], x[..., ::2, 1::2], x[..., 1::2, 1::2]],
        axis=1)                                              # (B, 4*C1, H/2, W/2)
    w = params['conv_weight'].reshape(C2, -1)                # (C2, 4*C1), 1x1 kernel
    y = jnp.einsum('bchw,oc->bohw', xc, w)
    scale = params['bn_gamma'] / jnp.sqrt(params['bn_var'] + _BN_EPS)
    shift = params['bn_beta'] - params['bn_mean'] * scale
    y = y * scale[None, :, None, None] + shift[None, :, None, None]
    return jnp.maximum(y, 0.0)


def init_params(key, c1, c2):
    """Synthetic parameters matching the nn module shapes (conv bias-free, BN affine)."""
    ks = jax.random.split(key, 5)
    fan_in = 4 * c1
    bound = 1.0 / math.sqrt(fan_in)
    return {
        'conv_weight': jax.random.uniform(ks[0], (c2, 4 * c1, 1, 1), jnp.float32,
                                          -bound, bound),
        'bn_gamma': jax.random.uniform(ks[1], (c2,), jnp.float32, 0.5, 1.5),
        'bn_beta': jax.random.uniform(ks[2], (c2,), jnp.float32, -0.5, 0.5),
        'bn_mean': jax.random.uniform(ks[3], (c2,), jnp.float32, -0.5, 0.5),
        'bn_var': jax.random.uniform(ks[4], (c2,), jnp.float32, 0.5, 1.5),
    }


if __name__ == "__main__":
    B, C1, H, W = 2, 4, 16, 16      # NCHW input
    C2 = 128                        # Focus conv output channels (lane-dense output)

    key = jax.random.PRNGKey(0)
    kx, kp = jax.random.split(key)
    x = jax.random.normal(kx, (B, C1, H, W), jnp.float32)
    params = init_params(kp, C1, C2)

    out = q_focus(x, params)
    out = jax.block_until_ready(out)

    ref = reference(x, params)
    assert out.shape == (B, C2, H // 2, W // 2), out.shape
    if not jnp.allclose(out, ref, atol=2e-2, rtol=2e-2):
        err = float(jnp.max(jnp.abs(out - ref)))
        raise AssertionError(f"Pallas kernel output mismatch vs JAX reference (max |err|={err})")

    print("KERNEL_OK")
</pallas_src>

<mosaic_0001>
module attributes {stable_mosaic.version = 11 : i64} {
  func.func @_focus_conv_kernel(%arg0: i32, %arg1: memref<1x64x16xf32, #tpu.memory_space<vmem>>, %arg2: memref<16x128xf32, #tpu.memory_space<vmem>>, %arg3: memref<1x128xf32, #tpu.memory_space<vmem>>, %arg4: memref<1x64x128xf32, #tpu.memory_space<vmem>>) attributes {dimension_semantics = [#tpu.dimension_semantics<parallel>], iteration_bounds = array<i64: 2>, scalar_prefetch = 0 : i64, scratch_operands = 0 : i64, tpu.core_type = #tpu.core_type<tc>, window_params = [{transform_indices = @transform_0, window_bounds = array<i64: 1, 64, 16>}, {pipeline_mode = #tpu.pipeline_mode<synchronous>, transform_indices = @transform_1, window_bounds = array<i64: 16, 128>}, {pipeline_mode = #tpu.pipeline_mode<synchronous>, transform_indices = @transform_2, window_bounds = array<i64: 1, 128>}, {transform_indices = @transform_3, window_bounds = array<i64: 1, 64, 128>}]} {
    %c0 = arith.constant 0 : index
    %c0_0 = arith.constant 0 : index
    %c0_1 = arith.constant 0 : index
    %0 = vector.load %arg1[%c0, %c0_0, %c0_1] : memref<1x64x16xf32, #tpu.memory_space<vmem>>, vector<1x64x16xf32>
    %1 = vector.shape_cast %0 : vector<1x64x16xf32> to vector<64x16xf32>
    %c0_2 = arith.constant 0 : index
    %c0_3 = arith.constant 0 : index
    %2 = vector.load %arg2[%c0_2, %c0_3] : memref<16x128xf32, #tpu.memory_space<vmem>>, vector<16x128xf32>
    %cst = arith.constant dense<0.000000e+00> : vector<64x128xf32>
    %3 = tpu.matmul %1, %2, %cst {dimension_numbers = #tpu.dot_dimension_numbers<[1], [0], [0], [1], [0, 0, 1, 1], [], []>} : vector<64x16xf32>, vector<16x128xf32>, vector<64x128xf32> -> vector<64x128xf32>
    %c0_4 = arith.constant 0 : index
    %c0_5 = arith.constant 0 : index
    %4 = vector.load %arg3[%c0_4, %c0_5] : memref<1x128xf32, #tpu.memory_space<vmem>>, vector<1x128xf32>
    %5 = vector.broadcast %4 : vector<1x128xf32> to vector<64x128xf32>
    %6 = arith.addf %3, %5 : vector<64x128xf32>
    %cst_6 = arith.constant 0.000000e+00 : f32
    %7 = vector.broadcast %cst_6 : f32 to vector<64x128xf32>
    %8 = arith.maximumf %6, %7 : vector<64x128xf32>
    %c0_7 = arith.constant 0 : index
    %c0_8 = arith.constant 0 : index
    %c0_9 = arith.constant 0 : index
    %9 = vector.load %arg4[%c0_7, %c0_8, %c0_9] : memref<1x64x128xf32, #tpu.memory_space<vmem>>, vector<1x64x128xf32>
    %10 = vector.shape_cast %9 : vector<1x64x128xf32> to vector<64x128xf32>
    %11 = vector.shape_cast %8 : vector<64x128xf32> to vector<1x64x128xf32>
    tpu.vector_store %arg4[%c0_7, %c0_8, %c0_9], %11 {strides = array<i32>} : memref<1x64x128xf32, #tpu.memory_space<vmem>>, vector<1x64x128xf32>,
    return
  }
  func.func @transform_0(%arg0: i32) -> (i32, i32, i32) {
    %c0_i32 = arith.constant 0 : i32
    %c0_i32_0 = arith.constant 0 : i32
    %c0_i32_1 = arith.constant 0 : i32
    return %arg0, %c0_i32, %c0_i32_0 : i32, i32, i32
  }
  func.func @transform_1(%arg0: i32) -> (i32, i32) {
    %c0_i32 = arith.constant 0 : i32
    %c0_i32_0 = arith.constant 0 : i32
    %c0_i32_1 = arith.constant 0 : i32
    return %c0_i32, %c0_i32_0 : i32, i32
  }
  func.func @transform_2(%arg0: i32) -> (i32, i32) {
    %c0_i32 = arith.constant 0 : i32
    %c0_i32_0 = arith.constant 0 : i32
    %c0_i32_1 = arith.constant 0 : i32
    return %c0_i32, %c0_i32_0 : i32, i32
  }
  func.func @transform_3(%arg0: i32) -> (i32, i32, i32) {
    %c0_i32 = arith.constant 0 : i32
    %c0_i32_0 = arith.constant 0 : i32
    %c0_i32_1 = arith.constant 0 : i32
    return %arg0, %c0_i32, %c0_i32_0 : i32, i32, i32
  }
}

</mosaic_0001>

<bundles_post_ra>
// kernel: q_focus.1
= control target key start
LH: loop header
LB: loop body
LE: loop exit
PB: predicated region body
PF: predicated region fallthrough
CT: control target
= control target key end

     0   :  { %8 = vsyncpa [#allocation3], 0  ;;  %s710_s0 = inlined_call_operand.vmem [shape: f32[2,64,16], index: 0, kind: input, shape index: {}]   ;;  %s711_s1 = inlined_call_operand.vmem [shape: f32[16,128], index: 1, kind: input, shape index: {}]   ;;  %s712_s2 = inlined_call_operand.vmem [shape: f32[1,128], index: 2, kind: input, shape index: {}]   ;;  %s713_s3 = inlined_call_operand.hbm [shape: f32[2,64,128], index: 3, kind: output, shape index: {}]  }
   0x1   :  { %10 = vsyncpa [#allocation3 + $0x1], 0  ;;  %s587_s12 = smov 0   ;;  %s589_s13 = smov 0  }
   0x2   :  { %s591_s14 = smov 0   ;;  %s593_s15 = smov 0  }
   0x3 LB: > { %s608_s16 = sadd.s32 4294967295, %s562_s15   ;;  %s408_s17 = sadd.s32 4294967294, %s562_s15   ;;  %s562_s15 = sphi %s593_s15, %s719_s15   ;;  %s558_s14 = sphi %s591_s14, %s718_s14   ;;  %s554_s13 = sphi %s589_s13, %s717_s13   ;;  %s550_s12 = sphi %s587_s12, %s716_s12  }
   0x4   : > { %s612_s18 = sadd.s32 1, %s562_s15   ;;  %s91_s19 = sadd.s32 1, %s558_s14 }
   0x5   : > { %s88_s20 = ssub.s32 %s562_s15, %s612_s18  ;;  %p101_p0 = scmp.ne.s32.totalorder %s558_s14, %s554_s13 }
   0x6   : > { %p89_p1 = scmp.eq.s32.totalorder %s88_s20, 0  ;;  %p102_p2 = scmp.eq.s32.totalorder %s608_s16, 1 }
   0x7   : > { %p107_p3 = scmp.ne.s32.totalorder %s554_s13, %s550_s12  ;;  %p108_p4 = scmp.eq.s32.totalorder %s408_s17, 1 }
   0x8   : > { %s623_s21 = scalar_select %p89_p1, %s558_s14, %s91_s19  }
   0x9   : > { %p625_p5 = por %p102_p2, %p101_p0  ;;  %p629_p6 = por %p108_p4, %p107_p3 }
   0xa   : > { %p411_p7 = scmp.ge.s32.totalorder %s562_s15, 1  ;;  %p140_p8 = scmp.lt.s32.totalorder %s562_s15, 3 }
   0xc   : > { %p141_p9 = pnand %p411_p7, %p140_p8 }
   0xd   : > { %p164_p10 = scmp.lt.s32.totalorder (!%p141_p9), %s608_s16, 1  ;;  %s161_s6 = sand.u32 (!%p141_p9), 1, %s554_s13  }
   0xe   : > { %144 = sbr.rel (%p141_p9) target bundleno = 243 (0xf3), region = 32  ;;  %s412_s9 = sshll.u32 (!%p141_p9), %s161_s6, 6 }
   0xf   : > { %s163_s10 = scalar_lea.vmem (!%p141_p9), [#allocation2], %s412_s9  ;;  %s430_s11 = sshll.u32 (!%p141_p9), %s608_s16, 10 }
  0x10   : > { %s346_s17 = sshll.u32 (!%p141_p9), %s163_s10, 4  ;;  %s664_s24 = scalar_lea.hbm (!%p141_p9), %s713_s3, %s430_s11  ;;  %s666_s17 = int_to_ptr.vmem [resolvable:$true] %s346_s17 }
  0x11   : > { %s502_s25 = scalar_lea.vmem (!%p141_p9), %s666_s17, 1024  ;;  %s564_s26 = smov (!%p141_p9), [#allocation2]  }
  0x12   : > { %p503_p11 = scmp.ne.s32.totalorder (!%p141_p9), %s666_s17, %s502_s25  ;;  %s506_s27 = sshll.u32 (!%p141_p9), %s564_s26, 4  ;;  %s507_s27 = int_to_ptr.vmem [resolvable:$false] %s506_s27 }
  0x13   : > { %v178_v0 = vld [vmem:[%s711_s1 + $0x8] sm:$0xff]  ;;  %v177_v1 = vld [vmem:[%s711_s1] sm:$0xff]  ;;  %s165_s28 = scalar_select %p164_p10, %s608_s16, 1  ;;  %vm186_vm0 = vcmask 130048  }
  0x14   : > { %441 = vmatprep.subr.mxu0 %v178_v0  ;;  %457 = vmatprep.subr.mxu1 %v178_v0  ;;  %v415_v10 = vld [vmem:[%s712_s2] ss:$0 sm:$0xff]  ;;  %s670_s16 = scalar_lea.sflag [#allocation3], %s161_s6  ;;  %p504_p12 = pnand %p503_p11, %p625_p5 }
  0x15   : > { %442 = vmatpush3.msra.mxu0 %v178_v0  ;;  %459 = vmatpush3.msra.mxu1 %v178_v0  ;;  %s429_s29 = sshll.u32 %s165_s28, 6  ;;  %s508_s28 = scalar_lea.vmem %s507_s27, 2048 }
  0x16   : > { %443 = vmatprep.subr.mxu0 %v177_v1  ;;  %458 = vmatprep.subr.mxu1 %v177_v1  ;;  %s168_s5 = scalar_lea.vmem %s710_s0, %s429_s29  ;;  %p505_p13 = pneg %p504_p12 }
  0x17   : > { %444 = vmatpush3.msra.mxu0 %v177_v1  ;;  %460 = vmatpush3.msra.mxu1 %v177_v1  ;;  %v169_v2 = vld [vmem:[%s168_s5] sm:$0xff]  ;;  %v170_v4 = vld [vmem:[%s168_s5 + $0x8] sm:$0xff]  ;;  %v171_v6 = vld [vmem:[%s168_s5 + $0x10] sm:$0xff]  ;;  %p509_p0 = scmp.lt.s32.totalorder %s666_s17, %s507_s27  ;;  %p510_p1 = scmp.lt.s32.totalorder %s508_s28, %s502_s25 }
  0x18   : > { %v173_v3 = vld [vmem:[%s168_s5 + $0x20] sm:$0xff]  ;;  %445 = vmatprep.mubr.msk.f32.mxu0 %vm186_vm0, %v169_v2  ;;  %v174_v5 = vld [vmem:[%s168_s5 + $0x28] sm:$0xff]  ;;  %v175_v7 = vld [vmem:[%s168_s5 + $0x30] sm:$0xff] }
  0x19   : > { %451 = vmatprep.mubr.msk.f32.mxu1 %vm186_vm0, %v173_v3  ;;  %446 = vmatmul.mubr.msk.f32.vlgmr.msra.gmra.mxu0 %vm186_vm0, %v170_v4  ;;  %v172_v8 = vld [vmem:[%s168_s5 + $0x18] sm:$0xff]  ;;  %p511_p2 = por %p510_p1, %p509_p0 }
  0x1a   : > { %452 = vmatmul.mubr.msk.f32.vlgmr.msra.gmra.mxu1 %vm186_vm0, %v174_v5  ;;  %448 = vmatprep.mubr.msk.f32.mxu0 %vm186_vm0, %v171_v6  ;;  %v176_v9 = vld [vmem:[%s168_s5 + $0x38] sm:$0xff] }
  0x1b   : > { %454 = vmatprep.mubr.msk.f32.mxu1 %vm186_vm0, %v175_v7  ;;  %p512_p3 = pnand %p511_p2, %p505_p13 }
  0x1d   : > { %449 = vmatmul.mubr.msk.f32.gmra.mxu0 %vm186_vm0, %v172_v8 }
  0x1e   : > { %455 = vmatmul.mubr.msk.f32.gmra.mxu1 %vm186_vm0, %v176_v9 }
  0xd9   : > { %v447_v11 = vpop.f32.mrf.mxu0 }
  0xda   : > { %v453_v12 = vpop.f32.mrf.mxu1  ;;  %v283_v13 = vadd.f32 %v447_v11, %v415_v10 }
  0xdb   : > { %v303_v14 = vadd.f32 %v453_v12, %v415_v10  ;;  %v277_v15 = vpop.f32.mrf.mxu0 }
  0xdc   : > { %v297_v16 = vpop.f32.mrf.mxu1  ;;  %v317_v17 = vmax.f32 %v283_v13, 0.0  ;;  %v278_v19 = vadd.f32 %v415_v10, %v277_v15 }
  0xdd   : > { %v321_v18 = vmax.f32 %v303_v14, 0.0  ;;  %v298_v20 = vadd.f32 %v415_v10, %v297_v16  ;;  %v450_v21 = vpop.f32.mrf.mxu0 }
  0xde   : > { %v456_v22 = vpop.f32.mrf.mxu1  ;;  %325 = vst [vmem:[%s163_s10 + $0x8] sm:$0xff] %v317_v17  ;;  %v316_v23 = vmax.f32 %v278_v19, 0.0  ;;  %v293_v25 = vadd.f32 %v450_v21, %v415_v10 }
  0xdf   : > { %329 = vst [vmem:[%s163_s10 + $0x28] sm:$0xff] %v321_v18  ;;  %v320_v24 = vmax.f32 %v298_v20, 0.0  ;;  %v313_v26 = vadd.f32 %v456_v22, %v415_v10  ;;  %v287_v27 = vpop.f32.mrf.mxu0 }
  0xe0   : > { %v307_v28 = vpop.f32.mrf.mxu1  ;;  %324 = vst [vmem:[%s163_s10] sm:$0xff] %v316_v23  ;;  %v319_v29 = vmax.f32 %v293_v25, 0.0  ;;  %v288_v31 = vadd.f32 %v415_v10, %v287_v27 }
  0xe1   : > { %328 = vst [vmem:[%s163_s10 + $0x20] sm:$0xff] %v320_v24  ;;  %v323_v30 = vmax.f32 %v313_v26, 0.0  ;;  %v308_v32 = vadd.f32 %v415_v10, %v307_v28 }
  0xe2   : > { %327 = vst [vmem:[%s163_s10 + $0x18] sm:$0xff] %v319_v29  ;;  %v318_v33 = vmax.f32 %v288_v31, 0.0 }
  0xe3   : > { %331 = vst [vmem:[%s163_s10 + $0x38] sm:$0xff] %v323_v30  ;;  %v322_v34 = vmax.f32 %v308_v32, 0.0 }
  0xe4   : > { %326 = vst [vmem:[%s163_s10 + $0x10] sm:$0xff] %v318_v33 }
  0xe5   : > { %330 = vst [vmem:[%s163_s10 + $0x30] sm:$0xff] %v322_v34 }
  0xe6   : > { %515 = shalt.err (!%p512_p3)
}
  0xe7   : > { %s516_s29 = scalar_lea.hbm %s664_s24, 1024  ;;  %s520_s5 = scalar_lea.hbm %s713_s3, 2048 }
  0xe8   : > { %p517_p4 = scmp.ne.s32.totalorder %s664_s24, %s516_s29  ;;  %p521_p9 = scmp.lt.s32.totalorder %s664_s24, %s713_s3 }
  0xe9   : > { %p522_p10 = scmp.lt.s32.totalorder %s520_s5, %s516_s29 }
  0xea   : > { %p518_p7 = pnand %p517_p4, %p625_p5 }
  0xeb   : > { %p523_p11 = por %p522_p10, %p521_p9 }
  0xec   : > { %p519_p8 = pneg %p518_p7 }
  0xee   : > { %p524_p12 = pnand %p523_p11, %p519_p8 }
  0xf0   : > { %527 = shalt.err (!%p524_p12)
}
  0xf1   : > { %s565_s8 = smov 128   ;;  %s566_s9 = smov 8  }
  0xf2   : > { %461 = dma.vmem_to_hbm [thread:$0]  (%p625_p5), %s666_s17, 1024, %s664_s24, %s670_s16, %s565_s8, %s565_s8, %s566_s9  }
  0xf3 PF: > { %p467_p13 = scmp.ge.s32.totalorder %s562_s15, 2  ;;  %s361_s10 = sand.u32 1, %s550_s12  }
  0xf4   : > { %s362_s11 = scalar_lea.sflag [#allocation3], %s361_s10 }
  0xf5   : > { %p464_p0 = pnand %p467_p13, %p629_p6 }
  0xf7   : > { %p465_p1 = pneg %p464_p0 }
  0xf9   : > { %545 = dma.done.wait (%p465_p1), %s362_s11, 1024  }
  0xfa   : > { %547 = vsyncadd (%p465_p1), %s362_s11, 4294966272  ;;  %p13_p2 = scmp.ge.s32.totalorder %s612_s18, 4   ;;  %s716_s12 = smov %s554_s13 }
  0xfb   : > { %s717_s13 = smov %s558_s14  ;;  %s718_s14 = smov %s623_s21 }
  0xfc   : > { %s719_s15 = smov %s612_s18  ;;  %15 = sbr.rel (!%p13_p2) target bundleno = 3 (0x3), region = 67 }
 0x101   :  { %367 = vsyncpa [#allocation3], 1 }
 0x102   :  { %369 = vsyncpa [#allocation3 + $0x1], 1 }

</bundles_post_ra>
